<compile_context>
chip_gen: v7x
topology: tpu7x:2x2x1
jax: 0.10.0
libtpu: 0.0.40
codegen_flags: <defaults>
</compile_context>

<pallas_src>
import functools

import jax
import jax.numpy as jnp
from jax import lax
from jax.experimental import pallas as pl
from jax.experimental.pallas import tpu as pltpu


def _round_up(x, m):
    return ((x + m - 1) // m) * m


def _tile_bytes(rows, cols, itemsize):
    """Approximate VMEM footprint of a (rows, cols) tile (sublane/lane padded)."""
    return _round_up(max(int(rows), 1), 8) * _round_up(max(int(cols), 1), 128) * itemsize


def _vmem_bytes(bt, *, v_num_p, q_num_p, v_dim, q_dim, K, h_out, h_dim):
    """Conservative VMEM estimate for one grid step at batch tile `bt`."""
    h_ext = h_out + 1
    total = 0
    # double-buffered per-grid-step blocks
    total += 2 * _tile_bytes(bt * v_num_p, v_dim, 2)               # v input (bf16)
    total += 2 * _tile_bytes(bt * q_num_p, q_dim, 2)               # q input (bf16)
    total += 2 * bt * h_out * _tile_bytes(v_num_p, q_num_p, 2)     # att output (bf16)
    total += 2 * _tile_bytes(bt, h_dim, 4)                         # logits output
    # resident weights (counted double-buffered to stay conservative)
    total += 2 * _tile_bytes(v_dim, K, 2) + 2 * _tile_bytes(q_dim, K, 2)
    total += 4 * _tile_bytes(1, K, 4)                              # bv + bq
    total += 2 * h_ext * _tile_bytes(v_num_p, K, 2)                # pre-broadcast h_mat (bf16)
    total += 2 * _tile_bytes(K, h_dim, 4) + 2 * _tile_bytes(1, h_dim, 4)
    # scratch (single copy)
    total += bt * _tile_bytes(v_num_p, K, 2) + bt * _tile_bytes(q_num_p, K, 2)
    total += _tile_bytes(h_ext * v_num_p, K, 2)                    # stacked-head LHS
    total += _tile_bytes(bt, K, 4)                                 # fusion logits
    return total


def _pick_bt(B, *, v_num_p, q_num_p, v_dim, q_dim, K, h_out, h_dim,
             target_rows=256, min_grid=2, vmem_budget=None):
    """Batch-tile size: fill the MXU (bt*v_num_p rows ~ target_rows), keep at
    least `min_grid` grid steps (v7x: 2 TensorCores), divide B, fit VMEM."""
    bt = max(1, min(B, target_rows // max(v_num_p, 1)))
    if B >= min_grid:
        bt = min(bt, B // min_grid)
    bt = max(bt, 1)

    def ok(cand):
        if B % cand != 0:
            return False
        if vmem_budget is None:
            return True
        return _vmem_bytes(cand, v_num_p=v_num_p, q_num_p=q_num_p, v_dim=v_dim,
                           q_dim=q_dim, K=K, h_out=h_out, h_dim=h_dim) <= vmem_budget

    while bt > 1 and not ok(bt):
        bt -= 1
    return bt


def ban_kernel(v_ref, q_ref, wv_ref, bv_ref, wq_ref, bq_ref,
               hmat_ref, hbias_ref, pool_ref, bnshift_ref,
               logits_ref, att_ref,
               v_scr, q_scr, stacked_scr, fl_scr,
               *, bt, v_num_p, q_num_p, v_num, q_num, h_out, k_dim):
    h_ext = h_out + 1

    # --- v_net / q_net: one bf16 MXU matmul per modality over all bt batch
    # elements at once (M = bt*v_num_p), f32 accumulation, bias + ReLU. --------
    v_feat = jnp.maximum(
        jnp.dot(v_ref[...], wv_ref[...], preferred_element_type=jnp.float32)
        + bv_ref[...], 0.0)
    q_feat = jnp.maximum(
        jnp.dot(q_ref[...], wq_ref[...], preferred_element_type=jnp.float32)
        + bq_ref[...], 0.0)

    # Split the batch dim back out (tile-aligned, free relayout).
    v3 = v_feat.reshape(bt, v_num_p, k_dim)
    q3 = q_feat.reshape(bt, q_num_p, k_dim)

    # Zero rows that exist only because of alignment padding: bias + ReLU makes
    # them nonzero and they would otherwise leak into the pooling sums.
    if v_num_p != v_num:
        ridx = lax.broadcasted_iota(jnp.int32, (bt, v_num_p, k_dim), 1)
        v3 = jnp.where(ridx < v_num, v3, 0.0)
    if q_num_p != q_num:
        ridx = lax.broadcasted_iota(jnp.int32, (bt, q_num_p, k_dim), 1)
        q3 = jnp.where(ridx < q_num, q3, 0.0)

    # Features live in bf16 VMEM scratch (halves scratch VMEM, feeds the MXU
    # directly); leading batch axis so per-batch access is a cheap untiled index.
    v_scr[...] = v3.astype(jnp.bfloat16)
    q_scr[...] = q3.astype(jnp.bfloat16)

    contract_last = (((1,), (1,)), ((), ()))   # contract K of both operands (no transpose)

    def batch_body(b, carry):
        v_b = v_scr[b]                     # (v_num_p, K) bf16
        q_b = q_scr[b]                     # (q_num_p, K) bf16

        # Stacked-head LHS written head-by-head into persistent bf16 scratch:
        # no concatenate, no in-kernel broadcasts (hmat is pre-broadcast on the
        # host).  The last head-group uses sum_h hmat so the head-summed
        # attention needed for pooling falls out of the same single MXU matmul.
        for h in range(h_ext):
            stacked_scr[pl.ds(h * v_num_p, v_num_p), :] = v_b * hmat_ref[h]

        att_all = lax.dot_general(stacked_scr[...], q_b, contract_last,
                                  preferred_element_type=jnp.float32)
        att3 = att_all.reshape(h_ext, v_num_p, q_num_p)

        # Per-head bias from SMEM scalars, added at store time (bf16 output).
        for h in range(h_out):
            att_ref[b, h] = (att3[h] + hbias_ref[0, h]).astype(att_ref.dtype)

        # Attention pooling with heads already summed:
        #   fl[k] = sum_v sum_q v_b[v,k] * att_sum[v,q] * q_b[q,k]
        att_sum = att3[h_out] + hbias_ref[0, h_out]
        tmp = jnp.dot(att_sum.astype(jnp.bfloat16), q_b,
                      preferred_element_type=jnp.float32)          # (v_num_p, K)
        fl_scr[pl.ds(b, 1), :] = jnp.sum(v_b * tmp, axis=0, keepdims=True)
        return carry

    if bt <= 4:
        for b in range(bt):                # small static trip count -> unrolled
            batch_body(b, 0)
    else:
        lax.fori_loop(0, bt, batch_body, 0)   # bound live ranges for large bt

    # AvgPool1d(k,k)*k == group-sum: one tiny (bt,K)@(K,h_dim) matmul with the
    # eval-mode BatchNorm scale pre-folded into the pooling matrix; only the BN
    # shift remains as an add.
    pooled = jnp.dot(fl_scr[...], pool_ref[...], preferred_element_type=jnp.float32)
    logits_ref[0] = (pooled + bnshift_ref[...]).astype(logits_ref.dtype)


def ban_forward(v, q, p, *, bt=None, target_rows=256, min_grid=2):
    """Eval-mode BANLayer forward.

    Returns (logits f32 (B, h_dim), att_maps bf16 (B, h_out, v_num, q_num)).
    For v5e tuning pass target_rows=128; for v6e pass min_grid=1.
    """
    B, v_num, v_dim = v.shape
    _, q_num, q_dim = q.shape
    K = p["wv"].shape[1]
    h_out = p["hmat"].shape[0]
    h_dim = p["pool"].shape[1]
    h_ext = h_out + 1

    # Alignment padding: 16 keeps bf16 (sublane-packed) tiles aligned; large q
    # is padded to 128 so the att stores are lane-dense unmasked vst.
    v_num_p = _round_up(v_num, 16)
    q_num_p = _round_up(q_num, 128 if q_num >= 128 else 16)

    # VMEM budget (per generation: v5e/v6e 128 MiB, v7x 64 MiB per TensorCore).
    try:
        vmem_cap = int(pltpu.get_tpu_info().vmem_capacity_bytes)
    except Exception:
        vmem_cap = 64 << 20            # conservative fallback (v7x per-TC size)
    vmem_limit = int(min(vmem_cap * 3 // 4, 112 << 20))

    if bt is None:
        bt = _pick_bt(B, v_num_p=v_num_p, q_num_p=q_num_p, v_dim=v_dim,
                      q_dim=q_dim, K=K, h_out=h_out, h_dim=h_dim,
                      target_rows=target_rows, min_grid=min_grid,
                      vmem_budget=int(vmem_limit * 0.7))
    assert B % bt == 0, (B, bt)
    grid_b = B // bt
    # TODO(synk): when B < 2 (single grid step) add a second parallel grid axis
    # over q tiles so both v7x TensorCores get work.

    # Host-side (free) folds:
    #   * extra "sum over heads" row appended to h_mat -> head-summed attention
    #     from the same stacked matmul
    #   * h_mat pre-broadcast to per-(head, v-row) form so the kernel inner loop
    #     has no broadcasts / concatenates
    #   * eval-mode BatchNorm scale folded into the 0/1 pooling matrix
    #   * bf16 casts for every large MXU operand (accumulation stays f32 in-kernel)
    hmat_ext = jnp.concatenate(
        [p["hmat"], jnp.sum(p["hmat"], axis=0, keepdims=True)], axis=0)       # (h_ext, K)
    hmat_rows = jnp.broadcast_to(
        hmat_ext[:, None, :], (h_ext, v_num_p, K)).astype(jnp.bfloat16)
    hbias_flat = p["hbias"].reshape(-1)
    hbias_ext = jnp.concatenate(
        [hbias_flat, jnp.sum(hbias_flat, keepdims=True)], axis=0).reshape(1, h_ext)
    pool_scaled = (p["pool"] * p["bnscale"]).astype(jnp.float32)              # (K, h_dim)

    if v_num_p != v_num:
        v = jnp.pad(v, ((0, 0), (0, v_num_p - v_num), (0, 0)))
    if q_num_p != q_num:
        q = jnp.pad(q, ((0, 0), (0, q_num_p - q_num), (0, 0)))
    v2 = v.reshape(B * v_num_p, v_dim).astype(jnp.bfloat16)
    q2 = q.reshape(B * q_num_p, q_dim).astype(jnp.bfloat16)
    wv = p["wv"].astype(jnp.bfloat16)
    wq = p["wq"].astype(jnp.bfloat16)

    kernel = functools.partial(ban_kernel, bt=bt, v_num_p=v_num_p, q_num_p=q_num_p,
                               v_num=v_num, q_num=q_num, h_out=h_out, k_dim=K)

    logits3, att4 = pl.pallas_call(
        kernel,
        out_shape=(
            jax.ShapeDtypeStruct((grid_b, bt, h_dim), jnp.float32),
            jax.ShapeDtypeStruct((B, h_out, v_num_p, q_num_p), jnp.bfloat16),
        ),
        grid_spec=pltpu.PrefetchScalarGridSpec(
            num_scalar_prefetch=0,
            grid=(grid_b,),
            in_specs=[
                pl.BlockSpec((bt * v_num_p, v_dim), lambda i: (i, 0)),        # v rows (bf16)
                pl.BlockSpec((bt * q_num_p, q_dim), lambda i: (i, 0)),        # q rows (bf16)
                pl.BlockSpec((v_dim, K), lambda i: (0, 0)),                   # wv (bf16, resident)
                pl.BlockSpec((1, K), lambda i: (0, 0)),                       # bv
                pl.BlockSpec((q_dim, K), lambda i: (0, 0)),                   # wq
                pl.BlockSpec((1, K), lambda i: (0, 0)),                       # bq
                pl.BlockSpec((h_ext, v_num_p, K), lambda i: (0, 0, 0)),       # h_mat rows (bf16)
                pl.BlockSpec((1, h_ext), lambda i: (0, 0),
                             memory_space=pltpu.MemorySpace.SMEM),            # h_bias scalars
                pl.BlockSpec((K, h_dim), lambda i: (0, 0)),                   # pool * bn_scale
                pl.BlockSpec((1, h_dim), lambda i: (0, 0)),                   # bn shift
            ],
            out_specs=[
                pl.BlockSpec((1, bt, h_dim), lambda i: (i, 0, 0)),
                pl.BlockSpec((bt, h_out, v_num_p, q_num_p), lambda i: (i, 0, 0, 0)),
            ],
            scratch_shapes=[
                pltpu.VMEM((bt, v_num_p, K), jnp.bfloat16),        # v_ (ReLU'd features)
                pltpu.VMEM((bt, q_num_p, K), jnp.bfloat16),        # q_
                pltpu.VMEM((h_ext * v_num_p, K), jnp.bfloat16),    # stacked-head LHS
                pltpu.VMEM((bt, K), jnp.float32),                  # per-batch fusion logits
            ],
        ),
        compiler_params=pltpu.CompilerParams(
            dimension_semantics=("parallel",),
            vmem_limit_bytes=vmem_limit),
        # TODO(synk): single-buffer the constant-index weight blocks via
        # pipeline_mode=pl.Buffered(1) when VMEM becomes the binding constraint.
    )(v2, q2, wv, p["bv"], wq, p["bq"], hmat_rows, hbias_ext, pool_scaled, p["bnshift"])

    logits = logits3.reshape(B, h_dim)
    att_maps = att4
    if v_num_p != v_num or q_num_p != q_num:
        att_maps = att_maps[:, :, :v_num, :q_num]
    # att_maps kept in bf16 (halves the dominant HBM writeback); cast if f32 needed.
    return logits, att_maps


def init_params(key, v_dim, q_dim, h_dim, h_out, k):
    """Deterministic synthetic parameters mirroring BANLayer.__init__ shapes."""
    K = h_dim * k
    keys = jax.random.split(key, 6)

    def weight_norm_linear(kw, kb, in_dim, out_dim):
        # nn.Linear init: U(-1/sqrt(in), 1/sqrt(in)); weight_norm(dim=None) with
        # g initialized to ||V||_F  =>  effective weight == V at init.
        bound = 1.0 / float(in_dim) ** 0.5
        V = jax.random.uniform(kw, (out_dim, in_dim), jnp.float32, -bound, bound)
        b = jax.random.uniform(kb, (out_dim,), jnp.float32, -bound, bound)
        g = jnp.linalg.norm(V)                      # scalar g
        W_eff = g * V / jnp.linalg.norm(V)          # fold weight-norm
        return W_eff.T, b[None, :]                  # (in, out), (1, out)

    wv, bv = weight_norm_linear(keys[0], keys[1], v_dim, K)
    wq, bq = weight_norm_linear(keys[2], keys[3], q_dim, K)

    hmat = jax.random.normal(keys[4], (h_out, K), jnp.float32)      # (1,h_out,1,K).normal_()
    hbias = jax.random.normal(keys[5], (h_out, 1), jnp.float32)     # (1,h_out,1,1).normal_()

    # 0/1 pooling matrix: pool[j, m] = 1 if j // k == m (AvgPool1d(k,k) * k == group sum)
    pool = (jnp.arange(K)[:, None] // k == jnp.arange(h_dim)[None, :]).astype(jnp.float32)

    # BatchNorm1d(h_dim), eval mode, default init (weight=1, bias=0, rm=0, rv=1)
    eps = 1e-5
    gamma = jnp.ones((h_dim,), jnp.float32)
    beta = jnp.zeros((h_dim,), jnp.float32)
    running_mean = jnp.zeros((h_dim,), jnp.float32)
    running_var = jnp.ones((h_dim,), jnp.float32)
    scale = gamma / jnp.sqrt(running_var + eps)
    shift = beta - running_mean * scale

    return dict(wv=wv, bv=bv, wq=wq, bq=bq, hmat=hmat, hbias=hbias, pool=pool,
                bnscale=scale[None, :], bnshift=shift[None, :])


def ban_reference(v, q, p, h_dim, k):
    """Pure-JAX f32 reference for correctness checking."""
    v_ = jax.nn.relu(jnp.einsum('bvd,dk->bvk', v, p["wv"]) + p["bv"])
    q_ = jax.nn.relu(jnp.einsum('bqd,dk->bqk', q, p["wq"]) + p["bq"])
    att = jnp.einsum('hk,bvk,bqk->bhvq', p["hmat"], v_, q_) + p["hbias"].reshape(1, -1, 1, 1)
    fl = jnp.einsum('bvk,bhvq,bqk->bk', v_, att, q_)
    pooled = fl.reshape(fl.shape[0], h_dim, k).sum(-1)
    logits = pooled * p["bnscale"] + p["bnshift"]
    return logits, att


def _assert_close(name, a, b, tol):
    a = jnp.asarray(a, jnp.float32)
    b = jnp.asarray(b, jnp.float32)
    denom = jnp.maximum(jnp.max(jnp.abs(b)), 1e-6)
    err = float(jnp.max(jnp.abs(a - b)) / denom)
    assert err < tol, (name, err)


if __name__ == "__main__":
    # Deliberately unaligned v_num / q_num so the padding + masking path is exercised.
    B, v_num, q_num = 4, 6, 10
    v_dim, q_dim, h_dim, h_out, k = 32, 48, 32, 2, 3

    key = jax.random.PRNGKey(0)
    kp, kv, kq = jax.random.split(key, 3)
    params = init_params(kp, v_dim, q_dim, h_dim, h_out, k)
    v = jax.random.normal(kv, (B, v_num, v_dim), jnp.float32)
    q = jax.random.normal(kq, (B, q_num, q_dim), jnp.float32)

    logits, att_maps = ban_forward(v, q, params)
    jax.block_until_ready((logits, att_maps))

    ref_logits, ref_att = ban_reference(v, q, params, h_dim, k)
    assert logits.shape == (B, h_dim)
    assert att_maps.shape == (B, h_out, v_num, q_num)
    # bf16 MXU operands + bf16 att output => relaxed (max-relative) tolerance.
    _assert_close("att_maps", att_maps, ref_att, tol=3e-2)
    _assert_close("logits", logits, ref_logits, tol=3e-2)

    print("KERNEL_OK")
</pallas_src>

<mosaic_0001>
module attributes {stable_mosaic.version = 11 : i64} {
  func.func @ban_kernel(%arg0: i32, %arg1: memref<32x32xbf16, #tpu.memory_space<vmem>>, %arg2: memref<32x48xbf16, #tpu.memory_space<vmem>>, %arg3: memref<32x96xbf16, #tpu.memory_space<vmem>>, %arg4: memref<1x96xf32, #tpu.memory_space<vmem>>, %arg5: memref<48x96xbf16, #tpu.memory_space<vmem>>, %arg6: memref<1x96xf32, #tpu.memory_space<vmem>>, %arg7: memref<3x16x96xbf16, #tpu.memory_space<vmem>>, %arg8: memref<1x3xf32, #tpu.memory_space<smem>>, %arg9: memref<96x32xf32, #tpu.memory_space<vmem>>, %arg10: memref<1x32xf32, #tpu.memory_space<vmem>>, %arg11: memref<1x2x32xf32, #tpu.memory_space<vmem>>, %arg12: memref<2x2x16x16xbf16, #tpu.memory_space<vmem>>, %arg13: memref<2x16x96xbf16, #tpu.memory_space<vmem>>, %arg14: memref<2x16x96xbf16, #tpu.memory_space<vmem>>, %arg15: memref<48x96xbf16, #tpu.memory_space<vmem>>, %arg16: memref<2x96xf32, #tpu.memory_space<vmem>>) attributes {dimension_semantics = [#tpu.dimension_semantics<parallel>], iteration_bounds = array<i64: 2>, scalar_prefetch = 0 : i64, scratch_operands = 4 : i64, tpu.core_type = #tpu.core_type<tc>, window_params = [{transform_indices = @transform_0, window_bounds = array<i64: 32, 32>}, {transform_indices = @transform_1, window_bounds = array<i64: 32, 48>}, {pipeline_mode = #tpu.pipeline_mode<synchronous>, transform_indices = @transform_2, window_bounds = array<i64: 32, 96>}, {pipeline_mode = #tpu.pipeline_mode<synchronous>, transform_indices = @transform_3, window_bounds = array<i64: 1, 96>}, {pipeline_mode = #tpu.pipeline_mode<synchronous>, transform_indices = @transform_4, window_bounds = array<i64: 48, 96>}, {pipeline_mode = #tpu.pipeline_mode<synchronous>, transform_indices = @transform_5, window_bounds = array<i64: 1, 96>}, {pipeline_mode = #tpu.pipeline_mode<synchronous>, transform_indices = @transform_6, window_bounds = array<i64: 3, 16, 96>}, {transform_indices = @transform_7, window_bounds = array<i64: 1, 3>}, {pipeline_mode = #tpu.pipeline_mode<synchronous>, transform_indices = @transform_8, window_bounds = array<i64: 96, 32>}, {pipeline_mode = #tpu.pipeline_mode<synchronous>, transform_indices = @transform_9, window_bounds = array<i64: 1, 32>}, {transform_indices = @transform_10, window_bounds = array<i64: 1, 2, 32>}, {transform_indices = @transform_11, window_bounds = array<i64: 2, 2, 16, 16>}]} {
    %c0 = arith.constant 0 : index
    %c0_0 = arith.constant 0 : index
    %0 = vector.load %arg1[%c0, %c0_0] : memref<32x32xbf16, #tpu.memory_space<vmem>>, vector<32x32xbf16>
    %c0_1 = arith.constant 0 : index
    %c0_2 = arith.constant 0 : index
    %1 = vector.load %arg3[%c0_1, %c0_2] : memref<32x96xbf16, #tpu.memory_space<vmem>>, vector<32x96xbf16>
    %cst = arith.constant dense<0.000000e+00> : vector<32x96xf32>
    %2 = tpu.matmul %0, %1, %cst {dimension_numbers = #tpu.dot_dimension_numbers<[1], [0], [0], [1], [0, 0, 1, 1], [], []>} : vector<32x32xbf16>, vector<32x96xbf16>, vector<32x96xf32> -> vector<32x96xf32>
    %c0_3 = arith.constant 0 : index
    %c0_4 = arith.constant 0 : index
    %3 = vector.load %arg4[%c0_3, %c0_4] : memref<1x96xf32, #tpu.memory_space<vmem>>, vector<1x96xf32>
    %4 = vector.broadcast %3 : vector<1x96xf32> to vector<32x96xf32>
    %5 = arith.addf %2, %4 : vector<32x96xf32>
    %cst_5 = arith.constant 0.000000e+00 : f32
    %6 = vector.broadcast %cst_5 : f32 to vector<32x96xf32>
    %7 = arith.maximumf %5, %6 : vector<32x96xf32>
    %c0_6 = arith.constant 0 : index
    %c0_7 = arith.constant 0 : index
    %8 = vector.load %arg2[%c0_6, %c0_7] : memref<32x48xbf16, #tpu.memory_space<vmem>>, vector<32x48xbf16>
    %c0_8 = arith.constant 0 : index
    %c0_9 = arith.constant 0 : index
    %9 = vector.load %arg5[%c0_8, %c0_9] : memref<48x96xbf16, #tpu.memory_space<vmem>>, vector<48x96xbf16>
    %cst_10 = arith.constant dense<0.000000e+00> : vector<32x96xf32>
    %10 = tpu.matmul %8, %9, %cst_10 {dimension_numbers = #tpu.dot_dimension_numbers<[1], [0], [0], [1], [0, 0, 1, 1], [], []>} : vector<32x48xbf16>, vector<48x96xbf16>, vector<32x96xf32> -> vector<32x96xf32>
    %c0_11 = arith.constant 0 : index
    %c0_12 = arith.constant 0 : index
    %11 = vector.load %arg6[%c0_11, %c0_12] : memref<1x96xf32, #tpu.memory_space<vmem>>, vector<1x96xf32>
    %12 = vector.broadcast %11 : vector<1x96xf32> to vector<32x96xf32>
    %13 = arith.addf %10, %12 : vector<32x96xf32>
    %cst_13 = arith.constant 0.000000e+00 : f32
    %14 = vector.broadcast %cst_13 : f32 to vector<32x96xf32>
    %15 = arith.maximumf %13, %14 : vector<32x96xf32>
    %16 = vector.shape_cast %7 : vector<32x96xf32> to vector<2x16x96xf32>
    %17 = vector.shape_cast %15 : vector<32x96xf32> to vector<2x16x96xf32>
    %18 = tpu.iota {dimensions = array<i32: 1>} : vector<2x16x96xi32>
    %c6_i32 = arith.constant 6 : i32
    %19 = vector.broadcast %c6_i32 : i32 to vector<2x16x96xi32>
    %20 = arith.cmpi slt, %18, %19 : vector<2x16x96xi32>
    %cst_14 = arith.constant 0.000000e+00 : f32
    %21 = vector.broadcast %cst_14 : f32 to vector<2x16x96xf32>
    %22 = arith.select %20, %16, %21 : vector<2x16x96xi1>, vector<2x16x96xf32>
    %23 = tpu.iota {dimensions = array<i32: 1>} : vector<2x16x96xi32>
    %c10_i32 = arith.constant 10 : i32
    %24 = vector.broadcast %c10_i32 : i32 to vector<2x16x96xi32>
    %25 = arith.cmpi slt, %23, %24 : vector<2x16x96xi32>
    %cst_15 = arith.constant 0.000000e+00 : f32
    %26 = vector.broadcast %cst_15 : f32 to vector<2x16x96xf32>
    %27 = arith.select %25, %17, %26 : vector<2x16x96xi1>, vector<2x16x96xf32>
    %28 = arith.truncf %22 : vector<2x16x96xf32> to vector<2x16x96xbf16>
    %c0_16 = arith.constant 0 : index
    %c0_17 = arith.constant 0 : index
    %c0_18 = arith.constant 0 : index
    %29 = vector.load %arg13[%c0_16, %c0_17, %c0_18] : memref<2x16x96xbf16, #tpu.memory_space<vmem>>, vector<2x16x96xbf16>
    tpu.vector_store %arg13[%c0_16, %c0_17, %c0_18], %28 {strides = array<i32>} : memref<2x16x96xbf16, #tpu.memory_space<vmem>>, vector<2x16x96xbf16>,
    %30 = arith.truncf %27 : vector<2x16x96xf32> to vector<2x16x96xbf16>
    %c0_19 = arith.constant 0 : index
    %c0_20 = arith.constant 0 : index
    %c0_21 = arith.constant 0 : index
    %31 = vector.load %arg14[%c0_19, %c0_20, %c0_21] : memref<2x16x96xbf16, #tpu.memory_space<vmem>>, vector<2x16x96xbf16>
    tpu.vector_store %arg14[%c0_19, %c0_20, %c0_21], %30 {strides = array<i32>} : memref<2x16x96xbf16, #tpu.memory_space<vmem>>, vector<2x16x96xbf16>,
    %c0_22 = arith.constant 0 : index
    %c0_23 = arith.constant 0 : index
    %c0_24 = arith.constant 0 : index
    %32 = vector.load %arg13[%c0_22, %c0_23, %c0_24] : memref<2x16x96xbf16, #tpu.memory_space<vmem>>, vector<1x16x96xbf16>
    %33 = vector.shape_cast %32 : vector<1x16x96xbf16> to vector<16x96xbf16>
    %c0_25 = arith.constant 0 : index
    %c0_26 = arith.constant 0 : index
    %c0_27 = arith.constant 0 : index
    %34 = vector.load %arg14[%c0_25, %c0_26, %c0_27] : memref<2x16x96xbf16, #tpu.memory_space<vmem>>, vector<1x16x96xbf16>
    %35 = vector.shape_cast %34 : vector<1x16x96xbf16> to vector<16x96xbf16>
    %c0_28 = arith.constant 0 : index
    %c0_29 = arith.constant 0 : index
    %c0_30 = arith.constant 0 : index
    %36 = vector.load %arg7[%c0_28, %c0_29, %c0_30] : memref<3x16x96xbf16, #tpu.memory_space<vmem>>, vector<1x16x96xbf16>
    %37 = vector.shape_cast %36 : vector<1x16x96xbf16> to vector<16x96xbf16>
    %38 = arith.mulf %33, %37 : vector<16x96xbf16>
    %c0_31 = arith.constant 0 : index
    %c0_32 = arith.constant 0 : index
    %39 = vector.load %arg15[%c0_31, %c0_32] : memref<48x96xbf16, #tpu.memory_space<vmem>>, vector<16x96xbf16>
    tpu.vector_store %arg15[%c0_31, %c0_32], %38 {strides = array<i32>} : memref<48x96xbf16, #tpu.memory_space<vmem>>, vector<16x96xbf16>,
    %c1 = arith.constant 1 : index
    %c0_33 = arith.constant 0 : index
    %c0_34 = arith.constant 0 : index
    %40 = vector.load %arg7[%c1, %c0_33, %c0_34] : memref<3x16x96xbf16, #tpu.memory_space<vmem>>, vector<1x16x96xbf16>
    %41 = vector.shape_cast %40 : vector<1x16x96xbf16> to vector<16x96xbf16>
    %42 = arith.mulf %33, %41 : vector<16x96xbf16>
    %c16 = arith.constant 16 : index
    %c0_35 = arith.constant 0 : index
    %43 = vector.load %arg15[%c16, %c0_35] : memref<48x96xbf16, #tpu.memory_space<vmem>>, vector<16x96xbf16>
    tpu.vector_store %arg15[%c16, %c0_35], %42 {strides = array<i32>} : memref<48x96xbf16, #tpu.memory_space<vmem>>, vector<16x96xbf16>,
    %c2 = arith.constant 2 : index
    %c0_36 = arith.constant 0 : index
    %c0_37 = arith.constant 0 : index
    %44 = vector.load %arg7[%c2, %c0_36, %c0_37] : memref<3x16x96xbf16, #tpu.memory_space<vmem>>, vector<1x16x96xbf16>
    %45 = vector.shape_cast %44 : vector<1x16x96xbf16> to vector<16x96xbf16>
    %46 = arith.mulf %33, %45 : vector<16x96xbf16>
    %c32 = arith.constant 32 : index
    %c0_38 = arith.constant 0 : index
    %47 = vector.load %arg15[%c32, %c0_38] : memref<48x96xbf16, #tpu.memory_space<vmem>>, vector<16x96xbf16>
    tpu.vector_store %arg15[%c32, %c0_38], %46 {strides = array<i32>} : memref<48x96xbf16, #tpu.memory_space<vmem>>, vector<16x96xbf16>,
    %c0_39 = arith.constant 0 : index
    %c0_40 = arith.constant 0 : index
    %48 = vector.load %arg15[%c0_39, %c0_40] : memref<48x96xbf16, #tpu.memory_space<vmem>>, vector<48x96xbf16>
    %cst_41 = arith.constant dense<0.000000e+00> : vector<48x16xf32>
    %49 = tpu.matmul %48, %35, %cst_41 {dimension_numbers = #tpu.dot_dimension_numbers<[1], [1], [0], [0], [0, 0, 1, 0], [], []>} : vector<48x96xbf16>, vector<16x96xbf16>, vector<48x16xf32> -> vector<48x16xf32>
    %50 = vector.shape_cast %49 : vector<48x16xf32> to vector<3x16x16xf32>
    %51 = vector.extract_strided_slice %50 {offsets = [0, 0, 0], sizes = [1, 16, 16], strides = [1, 1, 1]} : vector<3x16x16xf32> to vector<1x16x16xf32>
    %52 = vector.shape_cast %51 : vector<1x16x16xf32> to vector<16x16xf32>
    %c0_42 = arith.constant 0 : index
    %c0_43 = arith.constant 0 : index
    %53 = memref.load %arg8[%c0_42, %c0_43] : memref<1x3xf32, #tpu.memory_space<smem>>
    %54 = vector.broadcast %53 : f32 to vector<16x16xf32>
    %55 = arith.addf %52, %54 : vector<16x16xf32>
    %56 = arith.truncf %55 : vector<16x16xf32> to vector<16x16xbf16>
    %c0_44 = arith.constant 0 : index
    %c0_45 = arith.constant 0 : index
    %c0_46 = arith.constant 0 : index
    %c0_47 = arith.constant 0 : index
    %57 = vector.load %arg12[%c0_44, %c0_45, %c0_46, %c0_47] : memref<2x2x16x16xbf16, #tpu.memory_space<vmem>>, vector<1x1x16x16xbf16>
    %58 = vector.shape_cast %57 : vector<1x1x16x16xbf16> to vector<16x16xbf16>
    %59 = vector.shape_cast %56 : vector<16x16xbf16> to vector<1x1x16x16xbf16>
    tpu.vector_store %arg12[%c0_44, %c0_45, %c0_46, %c0_47], %59 {strides = array<i32>} : memref<2x2x16x16xbf16, #tpu.memory_space<vmem>>, vector<1x1x16x16xbf16>,
    %60 = vector.extract_strided_slice %50 {offsets = [1, 0, 0], sizes = [1, 16, 16], strides = [1, 1, 1]} : vector<3x16x16xf32> to vector<1x16x16xf32>
    %61 = vector.shape_cast %60 : vector<1x16x16xf32> to vector<16x16xf32>
    %c0_48 = arith.constant 0 : index
    %c1_49 = arith.constant 1 : index
    %62 = memref.load %arg8[%c0_48, %c1_49] : memref<1x3xf32, #tpu.memory_space<smem>>
    %63 = vector.broadcast %62 : f32 to vector<16x16xf32>
    %64 = arith.addf %61, %63 : vector<16x16xf32>
    %65 = arith.truncf %64 : vector<16x16xf32> to vector<16x16xbf16>
    %c0_50 = arith.constant 0 : index
    %c1_51 = arith.constant 1 : index
    %c0_52 = arith.constant 0 : index
    %c0_53 = arith.constant 0 : index
    %66 = vector.load %arg12[%c0_50, %c1_51, %c0_52, %c0_53] : memref<2x2x16x16xbf16, #tpu.memory_space<vmem>>, vector<1x1x16x16xbf16>
    %67 = vector.shape_cast %66 : vector<1x1x16x16xbf16> to vector<16x16xbf16>
    %68 = vector.shape_cast %65 : vector<16x16xbf16> to vector<1x1x16x16xbf16>
    tpu.vector_store %arg12[%c0_50, %c1_51, %c0_52, %c0_53], %68 {strides = array<i32>} : memref<2x2x16x16xbf16, #tpu.memory_space<vmem>>, vector<1x1x16x16xbf16>,
    %69 = vector.extract_strided_slice %50 {offsets = [2, 0, 0], sizes = [1, 16, 16], strides = [1, 1, 1]} : vector<3x16x16xf32> to vector<1x16x16xf32>
    %70 = vector.shape_cast %69 : vector<1x16x16xf32> to vector<16x16xf32>
    %c0_54 = arith.constant 0 : index
    %c2_55 = arith.constant 2 : index
    %71 = memref.load %arg8[%c0_54, %c2_55] : memref<1x3xf32, #tpu.memory_space<smem>>
    %72 = vector.broadcast %71 : f32 to vector<16x16xf32>
    %73 = arith.addf %70, %72 : vector<16x16xf32>
    %74 = arith.truncf %73 : vector<16x16xf32> to vector<16x16xbf16>
    %cst_56 = arith.constant dense<0.000000e+00> : vector<16x96xf32>
    %75 = tpu.matmul %74, %35, %cst_56 {dimension_numbers = #tpu.dot_dimension_numbers<[1], [0], [0], [1], [0, 0, 1, 1], [], []>} : vector<16x16xbf16>, vector<16x96xbf16>, vector<16x96xf32> -> vector<16x96xf32>
    %76 = arith.extf %33 : vector<16x96xbf16> to vector<16x96xf32>
    %77 = arith.mulf %76, %75 : vector<16x96xf32>
    %cst_57 = arith.constant dense<0.000000e+00> : vector<96xf32>
    %78 = vector.multi_reduction <add>, %77, %cst_57 [0] : vector<16x96xf32> to vector<96xf32>
    %79 = vector.shape_cast %78 : vector<96xf32> to vector<1x96xf32>
    %c0_58 = arith.constant 0 : index
    %c0_59 = arith.constant 0 : index
    %80 = vector.load %arg16[%c0_58, %c0_59] : memref<2x96xf32, #tpu.memory_space<vmem>>, vector<1x96xf32>
    tpu.vector_store %arg16[%c0_58, %c0_59], %79 {strides = array<i32>} : memref<2x96xf32, #tpu.memory_space<vmem>>, vector<1x96xf32>,
    %c1_60 = arith.constant 1 : index
    %c0_61 = arith.constant 0 : index
    %c0_62 = arith.constant 0 : index
    %81 = vector.load %arg13[%c1_60, %c0_61, %c0_62] : memref<2x16x96xbf16, #tpu.memory_space<vmem>>, vector<1x16x96xbf16>
    %82 = vector.shape_cast %81 : vector<1x16x96xbf16> to vector<16x96xbf16>
    %c1_63 = arith.constant 1 : index
    %c0_64 = arith.constant 0 : index
    %c0_65 = arith.constant 0 : index
    %83 = vector.load %arg14[%c1_63, %c0_64, %c0_65] : memref<2x16x96xbf16, #tpu.memory_space<vmem>>, vector<1x16x96xbf16>
    %84 = vector.shape_cast %83 : vector<1x16x96xbf16> to vector<16x96xbf16>
    %c0_66 = arith.constant 0 : index
    %c0_67 = arith.constant 0 : index
    %c0_68 = arith.constant 0 : index
    %85 = vector.load %arg7[%c0_66, %c0_67, %c0_68] : memref<3x16x96xbf16, #tpu.memory_space<vmem>>, vector<1x16x96xbf16>
    %86 = vector.shape_cast %85 : vector<1x16x96xbf16> to vector<16x96xbf16>
    %87 = arith.mulf %82, %86 : vector<16x96xbf16>
    %c0_69 = arith.constant 0 : index
    %c0_70 = arith.constant 0 : index
    %88 = vector.load %arg15[%c0_69, %c0_70] : memref<48x96xbf16, #tpu.memory_space<vmem>>, vector<16x96xbf16>
    tpu.vector_store %arg15[%c0_69, %c0_70], %87 {strides = array<i32>} : memref<48x96xbf16, #tpu.memory_space<vmem>>, vector<16x96xbf16>,
    %c1_71 = arith.constant 1 : index
    %c0_72 = arith.constant 0 : index
    %c0_73 = arith.constant 0 : index
    %89 = vector.load %arg7[%c1_71, %c0_72, %c0_73] : memref<3x16x96xbf16, #tpu.memory_space<vmem>>, vector<1x16x96xbf16>
    %90 = vector.shape_cast %89 : vector<1x16x96xbf16> to vector<16x96xbf16>
    %91 = arith.mulf %82, %90 : vector<16x96xbf16>
    %c16_74 = arith.constant 16 : index
    %c0_75 = arith.constant 0 : index
    %92 = vector.load %arg15[%c16_74, %c0_75] : memref<48x96xbf16, #tpu.memory_space<vmem>>, vector<16x96xbf16>
    tpu.vector_store %arg15[%c16_74, %c0_75], %91 {strides = array<i32>} : memref<48x96xbf16, #tpu.memory_space<vmem>>, vector<16x96xbf16>,
    %c2_76 = arith.constant 2 : index
    %c0_77 = arith.constant 0 : index
    %c0_78 = arith.constant 0 : index
    %93 = vector.load %arg7[%c2_76, %c0_77, %c0_78] : memref<3x16x96xbf16, #tpu.memory_space<vmem>>, vector<1x16x96xbf16>
    %94 = vector.shape_cast %93 : vector<1x16x96xbf16> to vector<16x96xbf16>
    %95 = arith.mulf %82, %94 : vector<16x96xbf16>
    %c32_79 = arith.constant 32 : index
    %c0_80 = arith.constant 0 : index
    %96 = vector.load %arg15[%c32_79, %c0_80] : memref<48x96xbf16, #tpu.memory_space<vmem>>, vector<16x96xbf16>
    tpu.vector_store %arg15[%c32_79, %c0_80], %95 {strides = array<i32>} : memref<48x96xbf16, #tpu.memory_space<vmem>>, vector<16x96xbf16>,
    %c0_81 = arith.constant 0 : index
    %c0_82 = arith.constant 0 : index
    %97 = vector.load %arg15[%c0_81, %c0_82] : memref<48x96xbf16, #tpu.memory_space<vmem>>, vector<48x96xbf16>
    %cst_83 = arith.constant dense<0.000000e+00> : vector<48x16xf32>
    %98 = tpu.matmul %97, %84, %cst_83 {dimension_numbers = #tpu.dot_dimension_numbers<[1], [1], [0], [0], [0, 0, 1, 0], [], []>} : vector<48x96xbf16>, vector<16x96xbf16>, vector<48x16xf32> -> vector<48x16xf32>
    %99 = vector.shape_cast %98 : vector<48x16xf32> to vector<3x16x16xf32>
    %100 = vector.extract_strided_slice %99 {offsets = [0, 0, 0], sizes = [1, 16, 16], strides = [1, 1, 1]} : vector<3x16x16xf32> to vector<1x16x16xf32>
    %101 = vector.shape_cast %100 : vector<1x16x16xf32> to vector<16x16xf32>
    %c0_84 = arith.constant 0 : index
    %c0_85 = arith.constant 0 : index
    %102 = memref.load %arg8[%c0_84, %c0_85] : memref<1x3xf32, #tpu.memory_space<smem>>
    %103 = vector.broadcast %102 : f32 to vector<16x16xf32>
    %104 = arith.addf %101, %103 : vector<16x16xf32>
    %105 = arith.truncf %104 : vector<16x16xf32> to vector<16x16xbf16>
    %c1_86 = arith.constant 1 : index
    %c0_87 = arith.constant 0 : index
    %c0_88 = arith.constant 0 : index
    %c0_89 = arith.constant 0 : index
    %106 = vector.load %arg12[%c1_86, %c0_87, %c0_88, %c0_89] : memref<2x2x16x16xbf16, #tpu.memory_space<vmem>>, vector<1x1x16x16xbf16>
    %107 = vector.shape_cast %106 : vector<1x1x16x16xbf16> to vector<16x16xbf16>
    %108 = vector.shape_cast %105 : vector<16x16xbf16> to vector<1x1x16x16xbf16>
    tpu.vector_store %arg12[%c1_86, %c0_87, %c0_88, %c0_89], %108 {strides = array<i32>} : memref<2x2x16x16xbf16, #tpu.memory_space<vmem>>, vector<1x1x16x16xbf16>,
    %109 = vector.extract_strided_slice %99 {offsets = [1, 0, 0], sizes = [1, 16, 16], strides = [1, 1, 1]} : vector<3x16x16xf32> to vector<1x16x16xf32>
    %110 = vector.shape_cast %109 : vector<1x16x16xf32> to vector<16x16xf32>
    %c0_90 = arith.constant 0 : index
    %c1_91 = arith.constant 1 : index
    %111 = memref.load %arg8[%c0_90, %c1_91] : memref<1x3xf32, #tpu.memory_space<smem>>
    %112 = vector.broadcast %111 : f32 to vector<16x16xf32>
    %113 = arith.addf %110, %112 : vector<16x16xf32>
    %114 = arith.truncf %113 : vector<16x16xf32> to vector<16x16xbf16>
    %c1_92 = arith.constant 1 : index
    %c1_93 = arith.constant 1 : index
    %c0_94 = arith.constant 0 : index
    %c0_95 = arith.constant 0 : index
    %115 = vector.load %arg12[%c1_92, %c1_93, %c0_94, %c0_95] : memref<2x2x16x16xbf16, #tpu.memory_space<vmem>>, vector<1x1x16x16xbf16>
    %116 = vector.shape_cast %115 : vector<1x1x16x16xbf16> to vector<16x16xbf16>
    %117 = vector.shape_cast %114 : vector<16x16xbf16> to vector<1x1x16x16xbf16>
    tpu.vector_store %arg12[%c1_92, %c1_93, %c0_94, %c0_95], %117 {strides = array<i32>} : memref<2x2x16x16xbf16, #tpu.memory_space<vmem>>, vector<1x1x16x16xbf16>,
    %118 = vector.extract_strided_slice %99 {offsets = [2, 0, 0], sizes = [1, 16, 16], strides = [1, 1, 1]} : vector<3x16x16xf32> to vector<1x16x16xf32>
    %119 = vector.shape_cast %118 : vector<1x16x16xf32> to vector<16x16xf32>
    %c0_96 = arith.constant 0 : index
    %c2_97 = arith.constant 2 : index
    %120 = memref.load %arg8[%c0_96, %c2_97] : memref<1x3xf32, #tpu.memory_space<smem>>
    %121 = vector.broadcast %120 : f32 to vector<16x16xf32>
    %122 = arith.addf %119, %121 : vector<16x16xf32>
    %123 = arith.truncf %122 : vector<16x16xf32> to vector<16x16xbf16>
    %cst_98 = arith.constant dense<0.000000e+00> : vector<16x96xf32>
    %124 = tpu.matmul %123, %84, %cst_98 {dimension_numbers = #tpu.dot_dimension_numbers<[1], [0], [0], [1], [0, 0, 1, 1], [], []>} : vector<16x16xbf16>, vector<16x96xbf16>, vector<16x96xf32> -> vector<16x96xf32>
    %125 = arith.extf %82 : vector<16x96xbf16> to vector<16x96xf32>
    %126 = arith.mulf %125, %124 : vector<16x96xf32>
    %cst_99 = arith.constant dense<0.000000e+00> : vector<96xf32>
    %127 = vector.multi_reduction <add>, %126, %cst_99 [0] : vector<16x96xf32> to vector<96xf32>
    %128 = vector.shape_cast %127 : vector<96xf32> to vector<1x96xf32>
    %c1_100 = arith.constant 1 : index
    %c0_101 = arith.constant 0 : index
    %129 = vector.load %arg16[%c1_100, %c0_101] : memref<2x96xf32, #tpu.memory_space<vmem>>, vector<1x96xf32>
    tpu.vector_store %arg16[%c1_100, %c0_101], %128 {strides = array<i32>} : memref<2x96xf32, #tpu.memory_space<vmem>>, vector<1x96xf32>,
    %c0_102 = arith.constant 0 : index
    %c0_103 = arith.constant 0 : index
    %130 = vector.load %arg16[%c0_102, %c0_103] : memref<2x96xf32, #tpu.memory_space<vmem>>, vector<2x96xf32>
    %c0_104 = arith.constant 0 : index
    %c0_105 = arith.constant 0 : index
    %131 = vector.load %arg9[%c0_104, %c0_105] : memref<96x32xf32, #tpu.memory_space<vmem>>, vector<96x32xf32>
    %cst_106 = arith.constant dense<0.000000e+00> : vector<2x32xf32>
    %132 = tpu.matmul %130, %131, %cst_106 {dimension_numbers = #tpu.dot_dimension_numbers<[1], [0], [0], [1], [0, 0, 1, 1], [], []>} : vector<2x96xf32>, vector<96x32xf32>, vector<2x32xf32> -> vector<2x32xf32>
    %c0_107 = arith.constant 0 : index
    %c0_108 = arith.constant 0 : index
    %133 = vector.load %arg10[%c0_107, %c0_108] : memref<1x32xf32, #tpu.memory_space<vmem>>, vector<1x32xf32>
    %134 = vector.broadcast %133 : vector<1x32xf32> to vector<2x32xf32>
    %135 = arith.addf %132, %134 : vector<2x32xf32>
    %c0_109 = arith.constant 0 : index
    %c0_110 = arith.constant 0 : index
    %c0_111 = arith.constant 0 : index
    %136 = vector.load %arg11[%c0_109, %c0_110, %c0_111] : memref<1x2x32xf32, #tpu.memory_space<vmem>>, vector<1x2x32xf32>
    %137 = vector.shape_cast %136 : vector<1x2x32xf32> to vector<2x32xf32>
    %138 = vector.shape_cast %135 : vector<2x32xf32> to vector<1x2x32xf32>
    tpu.vector_store %arg11[%c0_109, %c0_110, %c0_111], %138 {strides = array<i32>} : memref<1x2x32xf32, #tpu.memory_space<vmem>>, vector<1x2x32xf32>,
    return
  }
  func.func @transform_0(%arg0: i32) -> (i32, i32) {
    %c0_i32 = arith.constant 0 : i32
    %c0_i32_0 = arith.constant 0 : i32
    return %arg0, %c0_i32 : i32, i32
  }
  func.func @transform_1(%arg0: i32) -> (i32, i32) {
    %c0_i32 = arith.constant 0 : i32
    %c0_i32_0 = arith.constant 0 : i32
    return %arg0, %c0_i32 : i32, i32
  }
  func.func @transform_2(%arg0: i32) -> (i32, i32) {
    %c0_i32 = arith.constant 0 : i32
    %c0_i32_0 = arith.constant 0 : i32
    %c0_i32_1 = arith.constant 0 : i32
    return %c0_i32, %c0_i32_0 : i32, i32
  }
  func.func @transform_3(%arg0: i32) -> (i32, i32) {
    %c0_i32 = arith.constant 0 : i32
    %c0_i32_0 = arith.constant 0 : i32
    %c0_i32_1 = arith.constant 0 : i32
    return %c0_i32, %c0_i32_0 : i32, i32
  }
  func.func @transform_4(%arg0: i32) -> (i32, i32) {
    %c0_i32 = arith.constant 0 : i32
    %c0_i32_0 = arith.constant 0 : i32
    %c0_i32_1 = arith.constant 0 : i32
    return %c0_i32, %c0_i32_0 : i32, i32
  }
  func.func @transform_5(%arg0: i32) -> (i32, i32) {
    %c0_i32 = arith.constant 0 : i32
    %c0_i32_0 = arith.constant 0 : i32
    %c0_i32_1 = arith.constant 0 : i32
    return %c0_i32, %c0_i32_0 : i32, i32
  }
  func.func @transform_6(%arg0: i32) -> (i32, i32, i32) {
    %c0_i32 = arith.constant 0 : i32
    %c0_i32_0 = arith.constant 0 : i32
    %c0_i32_1 = arith.constant 0 : i32
    %c0_i32_2 = arith.constant 0 : i32
    return %c0_i32, %c0_i32_0, %c0_i32_1 : i32, i32, i32
  }
  func.func @transform_7(%arg0: i32) -> (i32, i32) {
    %c0_i32 = arith.constant 0 : i32
    %c0_i32_0 = arith.constant 0 : i32
    %c0_i32_1 = arith.constant 0 : i32
    return %c0_i32, %c0_i32_0 : i32, i32
  }
  func.func @transform_8(%arg0: i32) -> (i32, i32) {
    %c0_i32 = arith.constant 0 : i32
    %c0_i32_0 = arith.constant 0 : i32
    %c0_i32_1 = arith.constant 0 : i32
    return %c0_i32, %c0_i32_0 : i32, i32
  }
  func.func @transform_9(%arg0: i32) -> (i32, i32) {
    %c0_i32 = arith.constant 0 : i32
    %c0_i32_0 = arith.constant 0 : i32
    %c0_i32_1 = arith.constant 0 : i32
    return %c0_i32, %c0_i32_0 : i32, i32
  }
  func.func @transform_10(%arg0: i32) -> (i32, i32, i32) {
    %c0_i32 = arith.constant 0 : i32
    %c0_i32_0 = arith.constant 0 : i32
    %c0_i32_1 = arith.constant 0 : i32
    return %arg0, %c0_i32, %c0_i32_0 : i32, i32, i32
  }
  func.func @transform_11(%arg0: i32) -> (i32, i32, i32, i32) {
    %c0_i32 = arith.constant 0 : i32
    %c0_i32_0 = arith.constant 0 : i32
    %c0_i32_1 = arith.constant 0 : i32
    %c0_i32_2 = arith.constant 0 : i32
    return %arg0, %c0_i32, %c0_i32_0, %c0_i32_1 : i32, i32, i32, i32
  }
}

</mosaic_0001>

<bundles_post_ra>
// kernel: tpu_custom_call.1
= control target key start
LH: loop header
LB: loop body
LE: loop exit
PB: predicated region body
PF: predicated region fallthrough
CT: control target
= control target key end

     0   :  { %s2127_s0 = inlined_call_operand.vmem [shape: bf16[64,32], index: 0, kind: input, shape index: {}]   ;;  %s2128_s1 = inlined_call_operand.vmem [shape: bf16[64,48], index: 1, kind: input, shape index: {}]   ;;  %s2129_s2 = inlined_call_operand.vmem [shape: bf16[32,96], index: 2, kind: input, shape index: {}]   ;;  %s2130_s3 = inlined_call_operand.vmem [shape: f32[1,96], index: 3, kind: input, shape index: {}]   ;;  %s2131_s4 = inlined_call_operand.vmem [shape: bf16[48,96], index: 4, kind: input, shape index: {}]   ;;  %s2132_s5 = inlined_call_operand.vmem [shape: f32[1,96], index: 5, kind: input, shape index: {}]   ;;  %s2133_s6 = inlined_call_operand.vmem [shape: bf16[3,16,96], index: 6, kind: input, shape index: {}]   ;;  %s2134_s7 = inlined_call_operand.vmem [shape: f32[1,3], index: 7, kind: input, shape index: {}]   ;;  %s2135_s8 = inlined_call_operand.vmem [shape: f32[96,32], index: 8, kind: input, shape index: {}]   ;;  %s2136_s9 = inlined_call_operand.vmem [shape: f32[1,32], index: 9, kind: input, shape index: {}]   ;;  %s2137_s10 = inlined_call_operand.hbm [shape: f32[2,2,32], index: 10, kind: output, shape index: {0}]   ;;  %s2138_s11 = inlined_call_operand.hbm [shape: bf16[4,2,16,16], index: 11, kind: output, shape index: {1}]  }
   0x1   :  { %2139 = sst [smem:[#allocation15_spill]] %s2127_s0 }
   0x2   :  { %2140 = sst [smem:[#allocation16_spill]] %s2128_s1 }
   0x3   :  { %2141 = sst [smem:[#allocation17_spill]] %s2129_s2 }
   0x4   :  { %2142 = sst [smem:[#allocation18_spill]] %s2130_s3 }
   0x5   :  { %2143 = sst [smem:[#allocation19_spill]] %s2134_s7 }
   0x6   :  { %17 = vsyncpa [#allocation8], 0 }
   0x7   :  { %18 = vsyncpa [#allocation7], 0 }
   0x8   :  { %20 = vsyncpa [#allocation7 + $0x1], 0 }
   0x9   :  { %21 = vsyncpa [#allocation11], 0 }
   0xa   :  { %23 = vsyncpa [#allocation11 + $0x1], 0  ;;  %s1790_s17 = smov 0   ;;  %s1792_s18 = smov 0  }
   0xb   :  { %s1794_s19 = smov 0   ;;  %s1796_s20 = smov 0  }
   0xc LB: > { %s1811_s21 = sadd.s32 4294967295, %s1720_s20   ;;  %s1308_s22 = sadd.s32 4294967294, %s1720_s20   ;;  %s1720_s20 = sphi %s1796_s20, %s2155_s20   ;;  %s1716_s19 = sphi %s1794_s19, %s2154_s19   ;;  %s1712_s18 = sphi %s1792_s18, %s2153_s18   ;;  %s1708_s17 = sphi %s1790_s17, %s2152_s17  }
   0xd   : > { %s1815_s23 = sadd.s32 1, %s1720_s20   ;;  %s256_s24 = sadd.s32 1, %s1716_s19 }
   0xe   : > { %s253_s25 = ssub.s32 %s1720_s20, %s1815_s23  ;;  %p266_p0 = scmp.ne.s32.totalorder %s1716_s19, %s1712_s18 }
   0xf   : > { %p254_p1 = scmp.eq.s32.totalorder %s253_s25, 0  ;;  %p267_p2 = scmp.eq.s32.totalorder %s1811_s21, 1 }
  0x10   : > { %p272_p3 = scmp.ne.s32.totalorder %s1712_s18, %s1708_s17  ;;  %p273_p4 = scmp.eq.s32.totalorder %s1308_s22, 1 }
  0x11   : > { %s1826_s26 = scalar_select %p254_p1, %s1716_s19, %s256_s24  }
  0x12   : > { %p1828_p5 = por %p267_p2, %p266_p0  ;;  %p1832_p6 = por %p273_p4, %p272_p3 }
  0x13   : > { %p1309_p7 = scmp.ge.s32.totalorder %s1720_s20, 1  ;;  %p306_p8 = scmp.lt.s32.totalorder %s1720_s20, 3 }
  0x14   : > { %p1551_p9 = scmp.eq.s32.totalorder %s1811_s21, 0  ;;  %s2147_s7 = sld [smem:[#allocation19_spill]] }
  0x15   : > { %p1839_p10 = pnand %p1309_p7, %p306_p8 }
  0x17   : > { %p1540_p11 = pneg %p1839_p10 }
  0x19   : > { %p1541_p12 = pnand %p1551_p9, %p1540_p11 }
  0x1a   : > { %s334_s13 = sshll.u32 %s2147_s7, 4  ;;  %s335_s13 = int_to_ptr.vmem [resolvable:$true] %s334_s13 }
  0x1b   : > { %s1607_s14 = scalar_lea.vmem %s335_s13, 16  ;;  %p1609_p0 = pneg %p1541_p12 }
  0x1c   : > { %p1608_p13 = scmp.ne.s32.totalorder %s335_s13, %s1607_s14  ;;  %p1615_p3 = scmp.lt.s32.totalorder %s335_s13, %s335_s13 }
  0x1d   : > { %p1616_p4 = scmp.lt.s32.totalorder %s1607_s14, %s1607_s14 }
  0x1e   : > { %p1610_p1 = pnand %p1609_p0, %p1608_p13 }
  0x1f   : > { %p1617_p7 = por %p1616_p4, %p1615_p3 }
  0x20   : > { %p1611_p2 = pneg %p1610_p1 }
  0x22   : > { %p1618_p8 = pnand %p1617_p7, %p1611_p2 }
  0x24   : > { %1621 = shalt.err (!%p1618_p8)
}
  0x25   : > { %s1722_s15 = smov [#allocation6]   ;;  %371 = sbr.rel (%p1839_p10) target bundleno = 1243 (0x4db), region = 60 }
  0x26   : > { %1543 = dma.vmem_to_smem (!%p1541_p12), %s335_s13, 16, %s1722_s15, [#allocation8]  }
  0x2c   : > { %1695 = dma.done.wait (%p1551_p9), [#allocation8], 16  }
  0x2d   : > { %1697 = vsyncadd (%p1551_p9), [#allocation8], 4294967280 }
  0x2e   : > { %377 = sfence }
  0x2f   : > { %s2148_s2 = sld [smem:[#allocation17_spill]]  ;;  %s1316_s24 = sshll.u32 %s1811_s21, 2  ;;  %v1593_v1 = vld [vmem:[%s2131_s4] sm:$0xff]   ;;  %v1595_v3 = vld [vmem:[%s2131_s4 + $0x8] sm:$0xff]   ;;  %vm473_vm0 = vcmask 261120   ;;  %v1598_v4 = vld [vmem:[%s2131_s4 + $0x10] sm:$0xff]   ;;  %v638_v10 = vlaneseq }
  0x30   : > { %p423_p11 = scmp.lt.s32.totalorder %s1316_s24, 7  ;;  %1437 = vmatprep.subr.bf16.mxu1 %v1593_v1  ;;  %s2149_s0 = sld [smem:[#allocation15_spill]]  ;;  %vm578_vm1 = vcmask 392192   ;;  %v1723_v9 = vmov 0.0   ;;  %vm1724_vm2 = vmmov 0   ;;  %vm655_vm4 = vcmask 785408  }
  0x31   : > { %1438 = vmatpush3.bf16.msra.mxu1 %v1593_v1  ;;  %s2150_s1 = sld [smem:[#allocation16_spill]]  ;;  %s2151_s3 = sld [smem:[#allocation18_spill]]  ;;  %v639_v12 = vshrl.u32 %v638_v10, 7  ;;  %v1327_v21 = vld [vmem:[%s2132_s5] ss:$0 sm:$0xff]  ;;  %v1603_v43 = vld [vmem:[%s2133_s6 + $0x8] sm:$0xff]  }
  0x32   : > { %s2157_s24 = smov (!%p423_p11, %s1316_s24), 7  ;;  %1439 = vmatprep.subr.bf16.mxu1 %v1595_v3  ;;  %v1601_v42 = vld [vmem:[%s2133_s6] sm:$0xff]   ;;  %v1605_v44 = vld [vmem:[%s2133_s6 + $0x10] sm:$0xff]   ;;  %v1604_v51 = vld [vmem:[%s2133_s6 + $0x8] sm:$0xff]   ;;  %s768_s14 = sld [smem:[#allocation6]]  ;;  %vm780_vm6 = vcmask 125952  }
  0x33   : > { %s1317_s15 = sshll.u32 %s2157_s24, 2  ;;  %vm641_vm3 = vcmp.lt.s32.totalorder %v639_v12, 6  ;;  %v640_v24 = vadd.s32 8, %v639_v12  ;;  %v1602_v50 = vld [vmem:[%s2133_s6] sm:$0xff]   ;;  %v1606_v52 = vld [vmem:[%s2133_s6 + $0x10] sm:$0xff]   ;;  %s1347_s16 = sld [smem:[#allocation6 + $0x1]] }
  0x34   : > { %s1352_s30 = sld [smem:[#allocation6 + $0x2]]  ;;  %vm803_vm7 = vcmask 130048   ;;  %vm861_vm8 = vcmask 778240   ;;  %s1726_s12 = smov [#allocation10]  }
  0x35   : > { %v1592_v0 = vld [vmem:[%s2148_s2] sm:$0xff]   ;;  %v1594_v2 = vld [vmem:[%s2148_s2 + $0x8] sm:$0xff]   ;;  %1440 = vmatpush3.bf16.msra.mxu1 %v1595_v3  ;;  %vm648_vm5 = vcmp.lt.s32.totalorder %v640_v24, 10  ;;  %s1626_s2 = sshll.u32 %s1726_s12, 4  ;;  %s1627_s2 = int_to_ptr.vmem [resolvable:$false] %s1626_s2 }
  0x36   : > { %1429 = vmatprep.subr.bf16.mxu0 %v1592_v0  ;;  %s426_s29 = scalar_lea.vmem %s2149_s0, %s1317_s15  ;;  %1441 = vmatprep.subr.bf16.mxu1 %v1598_v4  ;;  %s1628_s24 = scalar_lea.vmem %s1627_s2, 1024 }
  0x37   : > { %1430 = vmatpush3.bf16.msra.mxu0 %v1592_v0  ;;  %s432_s7 = scalar_lea.vmem %s2150_s1, %s1317_s15  ;;  %v1596_v5 = vld [vmem:[%s426_s29] sm:$0xff]   ;;  %v1597_v6 = vld [vmem:[%s426_s29 + $0x8] sm:$0xff]   ;;  %s1943_s15 = sand.u32 1, %s1712_s18  }
  0x38   : > { %1431 = vmatprep.subr.bf16.mxu0 %v1594_v2  ;;  %1433 = vmatprep.mubr.msk.bf16.mxu0 %vm473_vm0, %v1596_v5  ;;  %v1599_v7 = vld [vmem:[%s432_s7] sm:$0xff]   ;;  %v1600_v8 = vld [vmem:[%s432_s7 + $0x8] sm:$0xff]   ;;  %v1945_v63 = vstv %s768_s14  ;;  %s1315_s22 = sshll.u32 %s1943_s15, 5  ;;  %s1394_s7 = sshll.u32 %s1811_s21, 9 }
  0x39   : > { %1443 = vmatprep.mubr.msk.bf16.mxu1 %vm578_vm1, %v1599_v7  ;;  %1442 = vmatpush3.bf16.msra.mxu1 %v1598_v4  ;;  %v1320_v11 = vld [vmem:[%s2151_s3] ss:$0 sm:$0xff]  ;;  %s1950_s25 = scalar_lea.vmem [#allocation10], %s1315_s22 }
  0x3a   : > { %1461 = vmatprep.subr.bf16.mxu1 %v1723_v9  ;;  %s1190_s22 = sshll.u32 %s1950_s25, 4  ;;  %s2050_s22 = int_to_ptr.vmem [resolvable:$true] %s1190_s22 }
  0x3b   : > { %1432 = vmatpush3.bf16.msra.mxu0 %v1594_v2  ;;  %s1622_s29 = scalar_lea.vmem %s2050_s22, 512  ;;  %p1629_p13 = scmp.lt.s32.totalorder %s2050_s22, %s1627_s2 }
  0x3c   : > { %1444 = vmatmul.mubr.msk.bf16.vlgmr.msra.gmra.mrb[0].mxu1 %vm578_vm1, %v1600_v8  ;;  %1447 = vmatprep.subr.bf16.mxu0 %v1723_v9  ;;  %v1954_v8 = vstv %s1347_s16  ;;  %s2047_s16 = scalar_lea.hbm %s2138_s11, %s1394_s7  ;;  %p1623_p9 = scmp.ne.s32.totalorder %s2050_s22, %s1622_s29 }
  0x3d   : > { %1463 = vmatprep.mubr.msk.bf16.mxu1 %vm1724_vm2, %v1723_v9  ;;  %p1630_p0 = scmp.lt.s32.totalorder %s1628_s24, %s1622_s29 }
  0x3e   : > { %1434 = vmatmul.mubr.msk.bf16.vlgmr.msra.gmra.mrb[0].mxu0 %vm473_vm0, %v1597_v6  ;;  %p1624_p10 = pnand %p1623_p9, %p1828_p5 }
  0x3f   : > { %1449 = vmatprep.mubr.msk.bf16.mxu0 %vm1724_vm2, %v1723_v9  ;;  %p1631_p1 = por %p1630_p0, %p1629_p13 }
  0x40   : > { %p1625_p12 = pneg %p1624_p10 }
  0x42   : > { %p1632_p2 = pnand %p1631_p1, %p1625_p12 }
 0x10f   : > { %v1445_v23 = vpop.f32.mrb[0].mxu1 }
 0x110   : > { %v619_v27 = vpop.f32.mrb[1].mxu1  ;;  %v628_v29 = vadd.f32 %v1445_v23, %v1327_v21 }
 0x111   : > { %v1435_v13 = vpop.f32.mrb[0].mxu0  ;;  %v1446_v30 = vpop.f32.mrb[2].mxu1  ;;  %v620_v31 = vadd.f32 %v1327_v21, %v619_v27 }
 0x112   : > { %v523_v14 = vadd.f32 %v1435_v13, %v1320_v11  ;;  %v514_v15 = vpop.f32.mrb[1].mxu0  ;;  %v631_v32 = vadd.f32 %v1446_v30, %v1327_v21  ;;  %v622_v33 = vpop.f32.mrb[3].mxu1  ;;  %v636_v36 = vmax.f32 %v628_v29, 0.0 }
 0x113   : > { %v515_v16 = vadd.f32 %v1320_v11, %v514_v15  ;;  %v1436_v17 = vpop.f32.mrb[2].mxu0  ;;  %v623_v34 = vadd.f32 %v1327_v21, %v622_v33  ;;  %v634_v38 = vmax.f32 %v620_v31, 0.0 }
 0x114   : > { %v531_v18 = vmax.f32 %v523_v14, 0.0  ;;  %v517_v19 = vpop.f32.mrb[3].mxu0  ;;  %v637_v35 = vmax.f32 %v631_v32, 0.0 }
 0x115   : > { %v529_v20 = vmax.f32 %v515_v16, 0.0  ;;  %v635_v37 = vmax.f32 %v623_v34, 0.0  ;;  %v1964_v19 = vstv %s1352_s30  ;;  %s1163_s30 = scalar_lea.sflag [#allocation11], %s1943_s15 }
 0x116   : > { %v645_v22 = vsel %vm641_vm3, %v531_v18, 0.0  ;;  %v652_v39 = vsel %vm648_vm5, %v637_v35, 0.0 }
 0x117   : > { %v654_v25 = vpack.c.bf16 %v1723_v9, %v645_v22  ;;  %v643_v26 = vsel %vm641_vm3, %v529_v20, 0.0  ;;  %v659_v40 = vpack.c.bf16 %v652_v39, %v636_v36  ;;  %v650_v41 = vsel %vm648_vm5, %v635_v37, 0.0 }
 0x118   : > { %v653_v28 = vpack.c.bf16 %v1723_v9, %v643_v26  ;;  %v658_v45 = vpack.c.bf16 %v650_v41, %v634_v38 }
 0x119   : > { %657 = vst.msk [vmem:[#allocation2 + $0x8] sm:$0xff] %vm655_vm4, %v654_v25  ;;  %661 = vst.msk [vmem:[#allocation3 + $0x8] sm:$0xff] %vm655_vm4, %v659_v40 }
 0x11a   : > { %656 = vst.msk [vmem:[#allocation2] sm:$0xff] %vm655_vm4, %v653_v28  ;;  %660 = vst.msk [vmem:[#allocation3] sm:$0xff] %vm655_vm4, %v658_v45 }
 0x120   : > { %v1922_v53 = vld [vmem:[#allocation2 + $0x8] sm:$0xff]  ;;  %v866_v62 = vld [vmem:[#allocation3 + $0x8] sm:$0xff] }
 0x121   : > { %v1905_v46 = vld [vmem:[#allocation2] sm:$0xff]  ;;  %v663_v54 = vld [vmem:[#allocation3] sm:$0xff]  ;;  %v875_v56 = vmul.bf16 %v1602_v50, %v1922_v53  ;;  %v885_v57 = vmul.bf16 %v1604_v51, %v1922_v53  ;;  %v895_v58 = vmul.bf16 %v1606_v52, %v1922_v53  ;;  %v910_v26 = vsel %vm655_vm4, %v866_v62, 0 }
 0x122   : > { %v672_v47 = vmul.bf16 %v1601_v42, %v1905_v46  ;;  %v683_v48 = vmul.bf16 %v1603_v43, %v1905_v46  ;;  %v694_v49 = vmul.bf16 %v1605_v44, %v1905_v46  ;;  %1462 = vmatpush3.bf16.msra.mxu1 %v663_v54  ;;  %v709_v55 = vsel %vm655_vm4, %v663_v54, 0 }
 0x123   : > { %1448 = vmatpush3.bf16.xpose.msra.mxu0 %v709_v55  ;;  %1467 = vmatprep.subr.bf16.mxu1 %v1723_v9  ;;  %v848_v30 = vunpack.c.l.bf16 %v1905_v46  ;;  %v849_v34 = vunpack.c.h.bf16 %v1905_v46 }
 0x124   : > { %673 = vst.msk [vmem:[#allocation4] sm:$0xff] %vm655_vm4, %v672_v47  ;;  %684 = vst.msk [vmem:[#allocation4 + $0x8] sm:$0xff] %vm655_vm4, %v683_v48  ;;  %1481 = vmatprep.subr.bf16.mxu0 %v1723_v9 }
 0x125   : > { %695 = vst.msk [vmem:[#allocation4 + $0x10] sm:$0xff] %vm655_vm4, %v694_v49 }
 0x12b   : > { %v696_v59 = vld [vmem:[#allocation4] sm:$0xff]  ;;  %v697_v60 = vld [vmem:[#allocation4 + $0x8] sm:$0xff] }
 0x12c   : > { %v698_v61 = vld [vmem:[#allocation4 + $0x10] sm:$0xff]  ;;  %876 = vst.msk [vmem:[#allocation4] sm:$0xff] %vm655_vm4, %v875_v56  ;;  %886 = vst.msk [vmem:[#allocation4 + $0x8] sm:$0xff] %vm655_vm4, %v885_v57  ;;  %1450 = vmatmul.mubr.msk.bf16.vlgmr.msra.gmra.mrb[4].mxu0 %vm655_vm4, %v696_v59 }
 0x12d   : > { %896 = vst.msk [vmem:[#allocation4 + $0x10] sm:$0xff] %vm655_vm4, %v895_v58  ;;  %1482 = vmatpush3.bf16.msra.mxu0 %v866_v62  ;;  %1453 = vmatprep.mubr.msk.bf16.mxu0 %vm1724_vm2, %v1723_v9 }
 0x133   : > { %v897_v27 = vld [vmem:[#allocation4] sm:$0xff]  ;;  %v898_v28 = vld [vmem:[#allocation4 + $0x8] sm:$0xff] }
 0x134   : > { %1454 = vmatmul.mubr.msk.bf16.gmra.mrb[8].mxu0 %vm655_vm4, %v697_v60  ;;  %v899_v29 = vld [vmem:[#allocation4 + $0x10] sm:$0xff] }
 0x135   : > { %1457 = vmatprep.mubr.msk.bf16.mxu0 %vm1724_vm2, %v1723_v9 }
 0x13c   : > { %1458 = vmatmul.mubr.msk.bf16.gmra.mrb[12].mxu0 %vm655_vm4, %v698_v61 }
 0x13d   : > { %1483 = vmatprep.mubr.msk.bf16.mxu0 %vm1724_vm2, %v1723_v9 }
 0x1ff   : > { %v745_v0 = vpop.f32.mrb[4].mxu0 }
 0x200   : > { %v770_v1 = vadd.f32 %v1945_v63, %v745_v0  ;;  %v1451_v2 = vpop.f32.mrb[5].mxu0 }
 0x201   : > { %v748_v3 = vpop.f32.mrb[6].mxu0 }
 0x202   : > { %v1385_v4 = vpack.c.bf16 %v770_v1, %v770_v1  ;;  %v771_v5 = vadd.f32 %v1945_v63, %v748_v3  ;;  %v1452_v6 = vpop.f32.mrb[7].mxu0 }
 0x203   : > { %v1063_v6 = vld [vmem:[%s2135_s8] sm:$0xff] }
 0x204   : > { %781 = vst.msk [vmem:[%s1950_s25] sm:$0xf] %vm780_vm6, %v1385_v4  ;;  %v1386_v7 = vpack.c.bf16 %v771_v5, %v771_v5 }
 0x206   : > { %782 = vst.msk [vmem:[%s1950_s25 + $0x4] sm:$0xf] %vm780_vm6, %v1386_v7  ;;  %v1064_v7 = vld [vmem:[%s2135_s8 + $0x8] sm:$0xff] }
 0x207   : > { %v753_v10 = vpop.f32.mrb[8].mxu0 }
 0x208   : > { %v785_v11 = vadd.f32 %v1954_v8, %v753_v10  ;;  %v1455_v12 = vpop.f32.mrb[9].mxu0  ;;  %v1725_v10 = vmov 0.0|0.0  }
 0x209   : > { %v756_v13 = vpop.f32.mrb[10].mxu0  ;;  %v1066_v12 = vld [vmem:[%s2135_s8 + $0x18] sm:$0xff] }
 0x20a   : > { %v1387_v14 = vpack.c.bf16 %v785_v11, %v785_v11  ;;  %v786_v15 = vadd.f32 %v1954_v8, %v756_v13  ;;  %v1456_v16 = vpop.f32.mrb[11].mxu0  ;;  %v1065_v11 = vld [vmem:[%s2135_s8 + $0x10] sm:$0xff] }
 0x20b   : > { %v1518_v13 = vpack.c.bf16 %v1066_v12, %v1065_v11 }
 0x20c   : > { %1350 = vst.msk [vmem:[%s1950_s25 + $0x8] sm:$0xf] %vm780_vm6, %v1387_v14  ;;  %v1388_v17 = vpack.c.bf16 %v786_v15, %v786_v15  ;;  %v1067_v14 = vld [vmem:[%s2135_s8 + $0x20] sm:$0xff]  ;;  %v1068_v15 = vld [vmem:[%s2135_s8 + $0x28] sm:$0xff] }
 0x20d   : > { %v1521_v16 = vpack.c.bf16 %v1068_v15, %v1067_v14 }
 0x20e   : > { %1351 = vst.msk [vmem:[%s1950_s25 + $0xc] sm:$0xf] %vm780_vm6, %v1388_v17  ;;  %v1069_v17 = vld [vmem:[%s2135_s8 + $0x30] sm:$0xff] }
 0x20f   : > { %v761_v18 = vpop.f32.mrb[12].mxu0 }
 0x210   : > { %v1459_v20 = vpop.f32.mrb[13].mxu0  ;;  %v800_v22 = vadd.f32 %v1964_v19, %v761_v18  ;;  %v1070_v18 = vld [vmem:[%s2135_s8 + $0x38] sm:$0xff] }
 0x211   : > { %v764_v21 = vpop.f32.mrb[14].mxu0  ;;  %v1071_v20 = vld [vmem:[%s2135_s8 + $0x40] sm:$0xff] }
 0x212   : > { %v801_v23 = vadd.f32 %v1964_v19, %v764_v21  ;;  %v1460_v24 = vpop.f32.mrb[15].mxu0  ;;  %v1072_v21 = vld [vmem:[%s2135_s8 + $0x48] sm:$0xff] }
 0x213   : > { %v1074_v24 = vld [vmem:[%s2135_s8 + $0x58] sm:$0xff] }
 0x214   : > { %v802_v25 = vpack.c.bf16 %v801_v23, %v800_v22  ;;  %v1527_v22 = vpack.c.bf16 %v1072_v21, %v1071_v20  ;;  %v1073_v23 = vld [vmem:[%s2135_s8 + $0x50] sm:$0xff] }
 0x216   : > { %1464 = vmatmul.mubr.msk.bf16.vlgmr.msra.gmra.mrb[4].mxu1 %vm803_vm7, %v802_v25  ;;  %v1530_v25 = vpack.c.bf16 %v1074_v24, %v1073_v23 }
 0x217   : > { %1468 = vmatpush3.bf16.xpose.msra.mxu1 %v910_v26  ;;  %1469 = vmatprep.mubr.msk.bf16.mxu1 %vm1724_vm2, %v1723_v9  ;;  %v1048_v26 = vunpack.c.l.bf16 %v1922_v53 }
 0x218   : > { %1514 = vmatprep.subr.bf16.mxu1 %v1725_v10 }
 0x21e   : > { %1470 = vmatmul.mubr.msk.bf16.vlgmr.msra.gmra.mrb[8].mxu1 %vm655_vm4, %v897_v27 }
 0x21f   : > { %1473 = vmatprep.mubr.msk.bf16.mxu1 %vm1724_vm2, %v1723_v9 }
 0x226   : > { %1474 = vmatmul.mubr.msk.bf16.gmra.mrb[12].mxu1 %vm655_vm4, %v898_v28 }
 0x227   : > { %1477 = vmatprep.mubr.msk.bf16.mxu1 %vm1724_vm2, %v1723_v9 }
 0x22e   : > { %1478 = vmatmul.mubr.msk.bf16.gmra.mrb[16].mxu1 %vm655_vm4, %v899_v29 }
 0x22f   : > { %1511 = vmatprep.mubr.msk.f32.mxu1 %vm1724_vm2, %v1723_v9 }
 0x2e9   : > { %v841_v31 = vpop.f32.mrb[4].mxu1 }
 0x2ea   : > { %v850_v32 = vmul.f32 %v848_v30, %v841_v31  ;;  %v1465_v33 = vpop.f32.mrb[5].mxu1  ;;  %v1049_v30 = vunpack.c.h.bf16 %v1922_v53 }
 0x2eb   : > { %v844_v35 = vpop.f32.mrb[6].mxu1 }
 0x2ec   : > { %v851_v36 = vmul.f32 %v849_v34, %v844_v35  ;;  %v1466_v37 = vpop.f32.mrb[7].mxu1  ;;  %v852_v38 = vsel %vm655_vm4, %v850_v32, 0.0 }
 0x2ee   : > { %v853_v39 = vsel %vm655_vm4, %v851_v36, 0.0 }
 0x2ef   : > { %v854_v40 = vadd.f32 %v853_v39, %v852_v38 }
 0x2f1   : > { %v855_v41 = vrot.slane %v854_v40, 4  ;;  %v946_v42 = vpop.f32.mrb[8].mxu1 }
 0x2f2   : > { %v971_v9 = vadd.f32 %v946_v42, %v1945_v63  ;;  %v1471_v43 = vpop.f32.mrb[9].mxu1 }
 0x2f3   : > { %v856_v44 = vadd.f32 %v855_v41, %v854_v40  ;;  %v949_v45 = vpop.f32.mrb[10].mxu1 }
 0x2f4   : > { %v1389_v47 = vpack.c.bf16 %v971_v9, %v971_v9  ;;  %v972_v46 = vadd.f32 %v949_v45, %v1945_v63  ;;  %v1472_v48 = vpop.f32.mrb[11].mxu1 }
 0x2f5   : > { %v857_v49 = vrot.slane %v856_v44, 2 }
 0x2f6   : > { %1366 = vst.msk [vmem:[%s1950_s25 + $0x10] sm:$0xf] %vm780_vm6, %v1389_v47  ;;  %v1390_v50 = vpack.c.bf16 %v972_v46, %v972_v46 }
 0x2f7   : > { %v858_v51 = vadd.f32 %v857_v49, %v856_v44 }
 0x2f8   : > { %1367 = vst.msk [vmem:[%s1950_s25 + $0x14] sm:$0xf] %vm780_vm6, %v1390_v50 }
 0x2f9   : > { %v859_v52 = vrot.slane %v858_v51, 1  ;;  %v954_v54 = vpop.f32.mrb[12].mxu1 }
 0x2fa   : > { %v986_v55 = vadd.f32 %v954_v54, %v1954_v8  ;;  %v1475_v56 = vpop.f32.mrb[13].mxu1 }
 0x2fb   : > { %v860_v57 = vadd.f32 %v859_v52, %v858_v51  ;;  %v957_v58 = vpop.f32.mrb[14].mxu1 }
 0x2fc   : > { %v1391_v59 = vpack.c.bf16 %v986_v55, %v986_v55  ;;  %v987_v60 = vadd.f32 %v957_v58, %v1954_v8  ;;  %v1476_v61 = vpop.f32.mrb[15].mxu1  ;;  %v1515_v8 = vpack.c.bf16 %v1064_v7, %v1063_v6 }
 0x2fd   : > { %862 = vst.msk [vmem:[#allocation5] sm:$0x1] %vm861_vm8, %v860_v57 }
 0x2fe   : > { %1371 = vst.msk [vmem:[%s1950_s25 + $0x18] sm:$0xf] %vm780_vm6, %v1391_v59  ;;  %v1392_v62 = vpack.c.bf16 %v987_v60, %v987_v60  ;;  %1516 = vmatpush3.bf16.msra.mxu1 %v1515_v8 }
 0x2ff   : > { %1517 = vmatprep.subr.bf16.mxu1 %v1725_v10 }
 0x300   : > { %1372 = vst.msk [vmem:[%s1950_s25 + $0x1c] sm:$0xf] %vm780_vm6, %v1392_v62 }
 0x301   : > { %v962_v63 = vpop.f32.mrb[16].mxu1 }
 0x302   : > { %v1479_v0 = vpop.f32.mrb[17].mxu1  ;;  %v1001_v2 = vadd.f32 %v962_v63, %v1964_v19  ;;  %1519 = vmatpush3.bf16.msra.mxu1 %v1518_v13 }
 0x303   : > { %v965_v1 = vpop.f32.mrb[18].mxu1  ;;  %1520 = vmatprep.subr.bf16.mxu1 %v1725_v10 }
 0x304   : > { %v1002_v3 = vadd.f32 %v965_v1, %v1964_v19  ;;  %v1480_v4 = vpop.f32.mrb[19].mxu1  ;;  %v1524_v19 = vpack.c.bf16 %v1070_v18, %v1069_v17 }
 0x306   : > { %v1003_v5 = vpack.c.bf16 %v1002_v3, %v1001_v2  ;;  %1522 = vmatpush3.bf16.msra.mxu1 %v1521_v16 }
 0x307   : > { %1523 = vmatprep.subr.bf16.mxu1 %v1725_v10 }
 0x308   : > { %1484 = vmatmul.mubr.msk.bf16.vlgmr.msra.gmra.mrb[16].mxu0 %vm803_vm7, %v1003_v5 }
 0x30a   : > { %1525 = vmatpush3.bf16.msra.mxu1 %v1524_v19 }
 0x30b   : > { %1526 = vmatprep.subr.bf16.mxu1 %v1725_v10 }
 0x30e   : > { %1528 = vmatpush3.bf16.msra.mxu1 %v1527_v22 }
 0x30f   : > { %1529 = vmatprep.subr.bf16.mxu1 %v1725_v10 }
 0x312   : > { %1531 = vmatpush3.bf16.msra.mxu1 %v1530_v25 }
 0x3db   : > { %v1041_v27 = vpop.f32.mrb[16].mxu0 }
 0x3dc   : > { %v1050_v28 = vmul.f32 %v1048_v26, %v1041_v27  ;;  %v1485_v29 = vpop.f32.mrb[17].mxu0 }
 0x3dd   : > { %v1044_v31 = vpop.f32.mrb[18].mxu0 }
 0x3de   : > { %v1051_v32 = vmul.f32 %v1049_v30, %v1044_v31  ;;  %v1486_v33 = vpop.f32.mrb[19].mxu0  ;;  %v1052_v34 = vsel %vm655_vm4, %v1050_v28, 0.0 }
 0x3e0   : > { %v1053_v35 = vsel %vm655_vm4, %v1051_v32, 0.0 }
 0x3e1   : > { %v1054_v36 = vadd.f32 %v1053_v35, %v1052_v34 }
 0x3e3   : > { %v1055_v37 = vrot.slane %v1054_v36, 4 }
 0x3e5   : > { %v1056_v38 = vadd.f32 %v1055_v37, %v1054_v36 }
 0x3e7   : > { %v1057_v39 = vrot.slane %v1056_v38, 2 }
 0x3e9   : > { %v1058_v40 = vadd.f32 %v1057_v39, %v1056_v38 }
 0x3eb   : > { %v1059_v41 = vrot.slane %v1058_v40, 1 }
 0x3ed   : > { %v1060_v42 = vadd.f32 %v1059_v41, %v1058_v40 }
 0x3ef   : > { %1061 = vst.msk [vmem:[#allocation5 + $0x1] sm:$0x1] %vm861_vm8, %v1060_v42 }
 0x3f6   : > { %v1062_v53 = vld [vmem:[#allocation5] sm:$0x3] }
 0x3f7   : > { %1512 = vmatmul.mubr.msk.f32.vlgmr.msra.gmra.mrb[20].mxu1 %vm655_vm4, %v1062_v53 }
 0x3f8   : > { %1635 = shalt.err (!%p1632_p2)
}
 0x3f9   : > { %s1636_s25 = scalar_lea.hbm %s2047_s16, 512  ;;  %s1640_s14 = scalar_lea.hbm %s2138_s11, 1024 }
 0x3fa   : > { %p1637_p3 = scmp.ne.s32.totalorder %s2047_s16, %s1636_s25  ;;  %p1641_p8 = scmp.lt.u32.totalorder %s2047_s16, %s2138_s11 }
 0x3fb   : > { %p1642_p11 = scmp.lt.u32.totalorder %s1640_s14, %s1636_s25  ;;  %p1644_p10 = scmp.lt.u32.totalorder %s1636_s25, %s2047_s16 }
 0x3fc   : > { %p1638_p4 = pnand %p1637_p3, %p1828_p5 }
 0x3fd   : > { %p1643_p9 = por %p1642_p11, %p1641_p8 }
 0x3fe   : > { %p1639_p7 = pneg %p1638_p4 }
 0x3ff   : > { %p1645_p12 = por %p1644_p10, %p1643_p9 }
 0x401   : > { %p1646_p13 = pnand %p1645_p12, %p1639_p7 }
 0x403   : > { %1649 = shalt.err (!%p1646_p13)
}
 0x404   : > { %s1727_s29 = smov 64   ;;  %s1728_s24 = smov 4   ;;  %v1375_v9 = vld [vmem:[%s2136_s9] ss:$0 sm:$0xff]  ;;  %vm1155_vm9 = vcmask 254976  }
 0x405   : > { %1537 = dma.vmem_to_hbm [thread:$0]  (%p1828_p5), %s2050_s22, 512, %s2047_s16, %s1163_s30, %s1727_s29, %s1727_s29, %s1728_s24  }
 0x406   : > { %s1314_s7 = sshll.u32 %s1943_s15, 1  ;;  %s1379_s25 = sshll.u32 %s1811_s21, 5 }
 0x407   : > { %s414_s12 = scalar_lea.vmem [#allocation9], %s1314_s7  ;;  %s2084_s3 = scalar_lea.hbm %s2137_s10, %s1379_s25 }
 0x408   : > { %s1176_s2 = sshll.u32 %s414_s12, 4  ;;  %s1158_s16 = scalar_lea.sflag [#allocation7], %s1943_s15  ;;  %s2086_s2 = int_to_ptr.vmem [resolvable:$true] %s1176_s2 }
 0x409   : > { %s1650_s22 = scalar_lea.vmem %s2086_s2, 32  ;;  %s1729_s21 = smov [#allocation9]  }
 0x40a   : > { %p1651_p0 = scmp.ne.s32.totalorder %s2086_s2, %s1650_s22  ;;  %s1654_s30 = sshll.u32 %s1729_s21, 4  ;;  %s1655_s30 = int_to_ptr.vmem [resolvable:$false] %s1654_s30 }
 0x40b   : > { %s1656_s29 = scalar_lea.vmem %s1655_s30, 64  ;;  %p1657_p3 = scmp.lt.s32.totalorder %s2086_s2, %s1655_s30 }
 0x40c   : > { %p1652_p1 = pnand %p1651_p0, %p1828_p5  ;;  %p1658_p4 = scmp.lt.s32.totalorder %s1656_s29, %s1650_s22 }
 0x40e   : > { %p1653_p2 = pneg %p1652_p1  ;;  %p1659_p7 = por %p1658_p4, %p1657_p3 }
 0x410   : > { %p1660_p8 = pnand %p1659_p7, %p1653_p2 }
 0x4ca   : > { %v1151_v43 = vpop.f32.mrb[20].mxu1 }
 0x4cb   : > { %v1152_v44 = vadd.f32 %v1375_v9, %v1151_v43  ;;  %v1513_v45 = vpop.f32.mrb[21].mxu1 }
 0x4cd   : > { %1156 = vst.msk [vmem:[%s414_s12] sm:$0x3] %vm1155_vm9, %v1152_v44 }
 0x4ce   : > { %1663 = shalt.err (!%p1660_p8)
}
 0x4cf   : > { %s1664_s0 = scalar_lea.hbm %s2084_s3, 32  ;;  %s1668_s24 = scalar_lea.hbm %s2137_s10, 64 }
 0x4d0   : > { %p1665_p11 = scmp.ne.s32.totalorder %s2084_s3, %s1664_s0  ;;  %p1669_p12 = scmp.lt.u32.totalorder %s2084_s3, %s2137_s10 }
 0x4d1   : > { %p1670_p13 = scmp.lt.u32.totalorder %s1668_s24, %s1664_s0  ;;  %p1672_p1 = scmp.lt.u32.totalorder %s1664_s0, %s2084_s3 }
 0x4d2   : > { %p1666_p9 = pnand %p1665_p11, %p1828_p5 }
 0x4d3   : > { %p1671_p0 = por %p1670_p13, %p1669_p12 }
 0x4d4   : > { %p1667_p10 = pneg %p1666_p9 }
 0x4d5   : > { %p1673_p2 = por %p1672_p1, %p1671_p0 }
 0x4d7   : > { %p1674_p3 = pnand %p1673_p2, %p1667_p10 }
 0x4d9   : > { %1677 = shalt.err (!%p1674_p3)
}
 0x4da   : > { %1536 = dma.vmem_to_hbm [thread:$0]  (%p1828_p5), %s2086_s2, 32, %s2084_s3, %s1158_s16  }
 0x4db PF: > { %p1553_p4 = scmp.ge.s32.totalorder %s1720_s20, 2  ;;  %s1205_s14 = sand.u32 1, %s1708_s17  }
 0x4dc   : > { %s1206_s25 = scalar_lea.sflag [#allocation7], %s1205_s14 }
 0x4dd   : > { %p1545_p7 = pnand %p1553_p4, %p1832_p6 }
 0x4df   : > { %1699 = dma.done.wait (!%p1545_p7), %s1206_s25, 32  }
 0x4e0   : > { %1701 = vsyncadd (!%p1545_p7), %s1206_s25, 4294967264  ;;  %s1215_s12 = scalar_lea.sflag [#allocation11], %s1205_s14 }
 0x4e1   : > { %1703 = dma.done.wait (!%p1545_p7), %s1215_s12, 512  }
 0x4e2   : > { %1705 = vsyncadd (!%p1545_p7), %s1215_s12, 4294966784  ;;  %p26_p5 = scmp.ge.s32.totalorder %s1815_s23, 4   ;;  %s2152_s17 = smov %s1712_s18 }
 0x4e3   : > { %s2153_s18 = smov %s1716_s19  ;;  %s2154_s19 = smov %s1826_s26 }
 0x4e4   : > { %s2155_s20 = smov %s1815_s23  ;;  %28 = sbr.rel (!%p26_p5) target bundleno = 12 (0xc), region = 127 }
 0x4eb   :  { %1220 = vsyncpa [#allocation7], 1 }
 0x4ec   :  { %1222 = vsyncpa [#allocation7 + $0x1], 1 }
 0x4ed   :  { %1223 = vsyncpa [#allocation11], 1 }
 0x4ee   :  { %1225 = vsyncpa [#allocation11 + $0x1], 1 }
 0x4ef   :  { %1226 = vsyncpa [#allocation8], 1 }
 0x4f0   :  { %1228 = vsyncpa [#allocation8 + $0x1], 1 }

</bundles_post_ra>
